<compile_context>
chip_gen: v7x
topology: tpu7x:2x2x1
jax: 0.10.0
libtpu: 0.0.40
codegen_flags: <defaults>
</compile_context>

<pallas_src>
import math

import jax
import jax.numpy as jnp
import numpy as np
from jax.experimental import pallas as pl
from jax.experimental.pallas import tpu as pltpu


def _round_up(x, m):
    return (x + m - 1) // m * m


def _cascade_kernel(lf_ref, lp_ref, we_ref, wl_ref, b_ref, out_ref):
    # lf : (Bg, K1)   flattened (and batch-grouped) l_feats
    # lp : (Bg, N)    batch-grouped l_pooler
    # we : (K1, N)    expanded weight: 0.5/T * W^T repeated over T (block-diag over groups)
    # wl : (N, N)     0.5 * W^T (block-diag over groups)
    # b  : (1, N)     bias (tiled over groups)
    # out: (Bg, N)    lane-dense output tile
    y = jnp.dot(lf_ref[...], we_ref[...], preferred_element_type=jnp.float32)
    y = y + jnp.dot(lp_ref[...], wl_ref[...], preferred_element_type=jnp.float32)
    y = y + b_ref[...].astype(jnp.float32)
    out_ref[...] = y.astype(out_ref.dtype)


def _pick_block_groups(n_groups, row_bytes, max_tile_bytes, min_steps):
    """Largest group-block bg with n_groups % bg == 0 and (bg % 8 == 0 or bg == n_groups)."""
    if n_groups <= 8:
        return n_groups
    cap = max(8, max_tile_bytes // max(row_bytes, 1))
    if min_steps > 1 and n_groups >= 8 * min_steps:
        cap = min(cap, n_groups // min_steps)      # keep the pipeline fed (>=2 steps/TC)
    blk = min(n_groups, cap)
    blk = max(8, (blk // 8) * 8)
    while blk >= 8:
        if n_groups % blk == 0:
            return blk
        blk -= 8
    return n_groups


def cascade_model(l_feats, l_pooler, weight, bias, *, block_groups=None, use_pallas=None):
    """l_feats: (B, C, T); l_pooler: (B, C); weight: (C, C); bias: (C,). Returns (B, C)."""
    B, C, T = l_feats.shape
    assert l_pooler.shape == (B, C)
    assert weight.shape == (C, C)
    assert bias.shape == (C,)

    in_dtype = l_feats.dtype
    itemsize = jnp.dtype(in_dtype).itemsize

    # ---- small-problem fallback (pallas_call launch/step overhead dominates) ----
    if use_pallas is None:
        use_pallas = l_feats.size * itemsize >= (256 << 10)
    if not use_pallas:
        fm = 0.5 * (jnp.mean(l_feats.astype(jnp.float32), axis=2)
                    + l_pooler.astype(jnp.float32))
        y = fm @ weight.astype(jnp.float32).T + bias.astype(jnp.float32)
        return y.astype(in_dtype)

    # ---- weight preprocessing (once, outside the kernel) ------------------------
    # mean over 2T fused positions == Linear(0.5*(mean_T(l_feats) + l_pooler));
    # the 0.5/T factor is folded into an expanded weight so the kernel is two
    # lane-dense MXU matmuls + bias (no cross-lane reduce inside the kernel).
    w_f32 = weight.astype(jnp.float32)
    w_exp = jnp.repeat(w_f32.T * (0.5 / T), T, axis=0)       # (C*T, C); row c*T+t = 0.5/T * W[:,c]^T
    w_lp = w_f32.T * 0.5                                      # (C, C)
    bias2 = bias.astype(jnp.float32).reshape(1, C)            # (1, C)

    # ---- lane-dense batch grouping ----------------------------------------------
    # Group rb batch rows per kernel row so the output tile's lane dim is a multiple
    # of 128 (no masked partial stores); weights become block-diagonal over groups.
    rb = 128 // math.gcd(C, 128)
    if rb > 1 and B % rb != 0:
        rb = 1
    n_groups = B // rb
    k1 = rb * C * T
    n_out = rb * C
    if rb > 1:
        w_exp = jax.scipy.linalg.block_diag(*([w_exp] * rb))   # (rb*C*T, rb*C)
        w_lp = jax.scipy.linalg.block_diag(*([w_lp] * rb))     # (rb*C, rb*C)
        bias2 = jnp.tile(bias2, (1, rb))                       # (1, rb*C)

    # bf16 inputs: keep both MXU operands native bf16 (f32 accumulation is preserved
    # via preferred_element_type inside the kernel).
    if in_dtype == jnp.bfloat16:
        w_exp = w_exp.astype(jnp.bfloat16)
        w_lp = w_lp.astype(jnp.bfloat16)

    lf_flat = l_feats.reshape(n_groups, k1)        # metadata-only (contiguous)
    lp_flat = l_pooler.reshape(n_groups, n_out)    # metadata-only

    # ---- generation-aware tiling / VMEM accounting (with (8,128) padding) --------
    try:
        vmem_cap = int(getattr(pltpu.get_tpu_info(), "vmem_capacity_bytes", 128 << 20))
    except Exception:  # pragma: no cover - conservative fallback
        vmem_cap = 128 << 20
    small_vmem = vmem_cap <= (64 << 20)            # v7x: 64 MiB per TensorCore
    max_tile_bytes = (8 << 20) if small_vmem else (16 << 20)
    min_steps = 4 if small_vmem else 2             # v7x: >=2 pipelined steps per TC

    k1_pad = _round_up(k1, 128)
    n_pad = _round_up(n_out, 128)
    row_bytes = itemsize * (k1_pad + 2 * n_pad)    # lf + lp + out per (grouped) batch row

    if block_groups is None:
        bg = _pick_block_groups(n_groups, row_bytes, max_tile_bytes, min_steps)
    else:
        bg = block_groups
    assert n_groups % bg == 0 and (bg % 8 == 0 or bg == n_groups), (n_groups, bg)
    grid = (n_groups // bg,)

    w_itemsize = jnp.dtype(w_exp.dtype).itemsize
    bg_pad = _round_up(bg, 8)
    tile_bytes = (
        2 * bg_pad * k1_pad * itemsize                      # l_feats tile, double-buffered
        + 2 * bg_pad * n_pad * itemsize                     # l_pooler tile
        + 2 * bg_pad * n_pad * itemsize                     # output tile
        + 2 * _round_up(k1, 8) * n_pad * w_itemsize         # W_exp (resident)
        + 2 * _round_up(n_out, 8) * n_pad * w_itemsize      # W_lp  (resident)
        + 2 * 8 * n_pad * w_itemsize)                       # bias  (resident)
    vmem_budget_cap = (32 << 20) if small_vmem else (96 << 20)
    vmem_limit = int(min(max(tile_bytes + (4 << 20), 16 << 20), vmem_budget_cap))

    # Advisory scheduling hints: the kernel is HBM-bandwidth-bound.
    flops = 2 * n_groups * k1 * n_out + 2 * n_groups * n_out * n_out + B * C
    bytes_accessed = int(itemsize * (lf_flat.size + lp_flat.size + B * C)
                         + w_itemsize * (w_exp.size + w_lp.size + bias2.size))

    out = pl.pallas_call(
        _cascade_kernel,
        out_shape=jax.ShapeDtypeStruct((n_groups, n_out), in_dtype),
        grid_spec=pltpu.PrefetchScalarGridSpec(
            num_scalar_prefetch=0,
            grid=grid,
            in_specs=[
                pl.BlockSpec((bg, k1), lambda i: (i, 0)),        # l_feats (flat, grouped)
                pl.BlockSpec((bg, n_out), lambda i: (i, 0)),     # l_pooler (grouped)
                pl.BlockSpec((k1, n_out), lambda i: (0, 0)),     # W_exp (VMEM-resident)
                pl.BlockSpec((n_out, n_out), lambda i: (0, 0)),  # W_lp  (VMEM-resident)
                pl.BlockSpec((1, n_out), lambda i: (0, 0)),      # bias  (VMEM-resident)
            ],
            out_specs=pl.BlockSpec((bg, n_out), lambda i: (i, 0)),
        ),
        compiler_params=pltpu.CompilerParams(
            dimension_semantics=("parallel",),
            vmem_limit_bytes=vmem_limit,
        ),
        cost_estimate=pl.CostEstimate(
            flops=flops, transcendentals=0, bytes_accessed=bytes_accessed),
    )(lf_flat, lp_flat, w_exp, w_lp, bias2)

    return out.reshape(B, C)                                   # metadata-only


def _reference(l_feats, l_pooler, weight, bias):
    """Pure-JAX mirror of the literal PyTorch forward (cat / permute / Linear / permute / mean)."""
    B, C, T = l_feats.shape
    fused = jnp.concatenate(
        [l_feats, jnp.broadcast_to(l_pooler[:, :, None], (B, C, T))], axis=2)  # (B, C, 2T)
    fused = jnp.transpose(fused, (0, 2, 1))                                    # (B, 2T, C)
    q = fused @ weight.T + bias                                                # (B, 2T, C)
    q = jnp.transpose(q, (0, 2, 1))                                            # (B, C, 2T)
    return jnp.mean(q, axis=2)                                                 # (B, C)


if __name__ == "__main__":
    # Config 1: small shapes consistent with the module (B=2, d_q=C=32, T=16).
    B, C, T = 2, 32, 16
    bound = 1.0 / np.sqrt(C)
    k1, k2, k3, k4 = jax.random.split(jax.random.PRNGKey(0), 4)
    l_feats = jax.random.normal(k1, (B, C, T), dtype=jnp.float32)
    l_pooler = jax.random.normal(k2, (B, C), dtype=jnp.float32)
    weight = jax.random.uniform(k3, (C, C), minval=-bound, maxval=bound, dtype=jnp.float32)
    bias = jax.random.uniform(k4, (C,), minval=-bound, maxval=bound, dtype=jnp.float32)

    ref = _reference(l_feats, l_pooler, weight, bias)
    # Force the Pallas path so the kernel itself is exercised at the small size.
    out = jax.block_until_ready(cascade_model(l_feats, l_pooler, weight, bias, use_pallas=True))
    np.testing.assert_allclose(np.asarray(out), np.asarray(ref), rtol=2e-5, atol=2e-5)
    # Auto path (small-problem pure-JAX fallback) must match too.
    out_auto = jax.block_until_ready(cascade_model(l_feats, l_pooler, weight, bias))
    np.testing.assert_allclose(np.asarray(out_auto), np.asarray(ref), rtol=2e-5, atol=2e-5)

    # Config 2: exercises batch grouping (rb=4 -> lane-dense 128-wide output) and a
    # multi-step, batch-blocked grid (block_groups=8 -> 4 grid steps).
    B2, C2, T2 = 128, 32, 24
    kk = jax.random.split(jax.random.PRNGKey(1), 4)
    lf2 = jax.random.normal(kk[0], (B2, C2, T2), dtype=jnp.float32)
    lp2 = jax.random.normal(kk[1], (B2, C2), dtype=jnp.float32)
    w2 = jax.random.uniform(kk[2], (C2, C2), minval=-bound, maxval=bound, dtype=jnp.float32)
    b2 = jax.random.uniform(kk[3], (C2,), minval=-bound, maxval=bound, dtype=jnp.float32)
    out2 = jax.block_until_ready(
        cascade_model(lf2, lp2, w2, b2, use_pallas=True, block_groups=8))
    ref2 = _reference(lf2, lp2, w2, b2)
    np.testing.assert_allclose(np.asarray(out2), np.asarray(ref2), rtol=2e-5, atol=2e-5)

    print("KERNEL_OK")
</pallas_src>

<mosaic_0001>
module attributes {stable_mosaic.version = 11 : i64} {
  func.func @_cascade_kernel(%arg0: i32, %arg1: memref<2x512xf32, #tpu.memory_space<vmem>>, %arg2: memref<2x32xf32, #tpu.memory_space<vmem>>, %arg3: memref<512x32xf32, #tpu.memory_space<vmem>>, %arg4: memref<32x32xf32, #tpu.memory_space<vmem>>, %arg5: memref<1x32xf32, #tpu.memory_space<vmem>>, %arg6: memref<2x32xf32, #tpu.memory_space<vmem>>) attributes {dimension_semantics = [#tpu.dimension_semantics<parallel>], iteration_bounds = array<i64: 1>, scalar_prefetch = 0 : i64, scratch_operands = 0 : i64, tpu.core_type = #tpu.core_type<tc>, window_params = [{transform_indices = @transform_0, window_bounds = array<i64: 2, 512>}, {transform_indices = @transform_1, window_bounds = array<i64: 2, 32>}, {pipeline_mode = #tpu.pipeline_mode<synchronous>, transform_indices = @transform_2, window_bounds = array<i64: 512, 32>}, {pipeline_mode = #tpu.pipeline_mode<synchronous>, transform_indices = @transform_3, window_bounds = array<i64: 32, 32>}, {pipeline_mode = #tpu.pipeline_mode<synchronous>, transform_indices = @transform_4, window_bounds = array<i64: 1, 32>}, {transform_indices = @transform_5, window_bounds = array<i64: 2, 32>}]} {
    %c0 = arith.constant 0 : index
    %c0_0 = arith.constant 0 : index
    %0 = vector.load %arg1[%c0, %c0_0] : memref<2x512xf32, #tpu.memory_space<vmem>>, vector<2x512xf32>
    %c0_1 = arith.constant 0 : index
    %c0_2 = arith.constant 0 : index
    %1 = vector.load %arg3[%c0_1, %c0_2] : memref<512x32xf32, #tpu.memory_space<vmem>>, vector<512x32xf32>
    %cst = arith.constant dense<0.000000e+00> : vector<2x32xf32>
    %2 = tpu.matmul %0, %1, %cst {dimension_numbers = #tpu.dot_dimension_numbers<[1], [0], [0], [1], [0, 0, 1, 1], [], []>} : vector<2x512xf32>, vector<512x32xf32>, vector<2x32xf32> -> vector<2x32xf32>
    %c0_3 = arith.constant 0 : index
    %c0_4 = arith.constant 0 : index
    %3 = vector.load %arg2[%c0_3, %c0_4] : memref<2x32xf32, #tpu.memory_space<vmem>>, vector<2x32xf32>
    %c0_5 = arith.constant 0 : index
    %c0_6 = arith.constant 0 : index
    %4 = vector.load %arg4[%c0_5, %c0_6] : memref<32x32xf32, #tpu.memory_space<vmem>>, vector<32x32xf32>
    %cst_7 = arith.constant dense<0.000000e+00> : vector<2x32xf32>
    %5 = tpu.matmul %3, %4, %cst_7 {dimension_numbers = #tpu.dot_dimension_numbers<[1], [0], [0], [1], [0, 0, 1, 1], [], []>} : vector<2x32xf32>, vector<32x32xf32>, vector<2x32xf32> -> vector<2x32xf32>
    %6 = arith.addf %2, %5 : vector<2x32xf32>
    %c0_8 = arith.constant 0 : index
    %c0_9 = arith.constant 0 : index
    %7 = vector.load %arg5[%c0_8, %c0_9] : memref<1x32xf32, #tpu.memory_space<vmem>>, vector<1x32xf32>
    %8 = vector.broadcast %7 : vector<1x32xf32> to vector<2x32xf32>
    %9 = arith.addf %6, %8 : vector<2x32xf32>
    %c0_10 = arith.constant 0 : index
    %c0_11 = arith.constant 0 : index
    %10 = vector.load %arg6[%c0_10, %c0_11] : memref<2x32xf32, #tpu.memory_space<vmem>>, vector<2x32xf32>
    tpu.vector_store %arg6[%c0_10, %c0_11], %9 {strides = array<i32>} : memref<2x32xf32, #tpu.memory_space<vmem>>, vector<2x32xf32>,
    return
  }
  func.func @transform_0(%arg0: i32) -> (i32, i32) {
    %c0_i32 = arith.constant 0 : i32
    %c0_i32_0 = arith.constant 0 : i32
    return %arg0, %c0_i32 : i32, i32
  }
  func.func @transform_1(%arg0: i32) -> (i32, i32) {
    %c0_i32 = arith.constant 0 : i32
    %c0_i32_0 = arith.constant 0 : i32
    return %arg0, %c0_i32 : i32, i32
  }
  func.func @transform_2(%arg0: i32) -> (i32, i32) {
    %c0_i32 = arith.constant 0 : i32
    %c0_i32_0 = arith.constant 0 : i32
    %c0_i32_1 = arith.constant 0 : i32
    return %c0_i32, %c0_i32_0 : i32, i32
  }
  func.func @transform_3(%arg0: i32) -> (i32, i32) {
    %c0_i32 = arith.constant 0 : i32
    %c0_i32_0 = arith.constant 0 : i32
    %c0_i32_1 = arith.constant 0 : i32
    return %c0_i32, %c0_i32_0 : i32, i32
  }
  func.func @transform_4(%arg0: i32) -> (i32, i32) {
    %c0_i32 = arith.constant 0 : i32
    %c0_i32_0 = arith.constant 0 : i32
    %c0_i32_1 = arith.constant 0 : i32
    return %c0_i32, %c0_i32_0 : i32, i32
  }
  func.func @transform_5(%arg0: i32) -> (i32, i32) {
    %c0_i32 = arith.constant 0 : i32
    %c0_i32_0 = arith.constant 0 : i32
    return %arg0, %c0_i32 : i32, i32
  }
}

</mosaic_0001>

<bundles_post_ra>
// kernel: tpu_custom_call.1
= control target key start
LH: loop header
LB: loop body
LE: loop exit
PB: predicated region body
PF: predicated region fallthrough
CT: control target
= control target key end

     0   :  { %v539_v3 = vmov 0.0|0.0   ;;  %vm540_vm0 = vmmov 0   ;;  %v541_v8 = vmov 0.0   ;;  %vm91_vm1 = vcmask 261120   ;;  %s800_s0 = inlined_call_operand.vmem [shape: f32[2,512], index: 0, kind: input, shape index: {}]   ;;  %s801_s1 = inlined_call_operand.vmem [shape: f32[2,32], index: 1, kind: input, shape index: {}]   ;;  %s802_s2 = inlined_call_operand.vmem [shape: f32[512,32], index: 2, kind: input, shape index: {}]   ;;  %s803_s3 = inlined_call_operand.vmem [shape: f32[32,32], index: 3, kind: input, shape index: {}]   ;;  %s804_s4 = inlined_call_operand.vmem [shape: f32[1,32], index: 4, kind: input, shape index: {}]   ;;  %s805_s5 = inlined_call_operand.hbm [shape: f32[2,32], index: 5, kind: output, shape index: {}]  }
   0x1   :  { %v87_v0 = vld [vmem:[%s803_s3] sm:$0xff]  ;;  %v88_v1 = vld [vmem:[%s803_s3 + $0x8] sm:$0xff]  ;;  %439 = vmatprep.subr.bf16.mxu0 %v539_v3  ;;  %436 = vmatprep.mubr.msk.f32.mxu0 %vm540_vm0, %v541_v8  ;;  %v89_v11 = vld [vmem:[%s803_s3 + $0x10] sm:$0xff]  ;;  %v542_v41 = vmov 1983009808   ;;  %v170_v43 = vlaneseq }
   0x2   :  { %v38_v2 = vld [vmem:[%s802_s2 + $0x80] sm:$0xff]  ;;  %v440_v4 = vpack.c.bf16 %v88_v1, %v87_v0  ;;  %v39_v5 = vld [vmem:[%s802_s2 + $0x88] sm:$0xff]  ;;  %v90_v12 = vld [vmem:[%s803_s3 + $0x18] sm:$0xff]  ;;  %v168_v42 = vunpack.c.l.s4 %v542_v41 }
   0x3   :  { %v22_v6 = vld [vmem:[%s802_s2] sm:$0xff]  ;;  %v23_v7 = vld [vmem:[%s802_s2 + $0x8] sm:$0xff]  ;;  %v445_v9 = vpack.c.bf16 %v39_v5, %v38_v2  ;;  %v40_v13 = vld [vmem:[%s802_s2 + $0x90] sm:$0xff]  ;;  %v443_v14 = vpack.c.bf16 %v90_v12, %v89_v11  ;;  %v171_v58 = vshrl.u32 %v170_v43, 7 }
   0x4   :  { %v447_v10 = vpack.c.bf16 %v23_v7, %v22_v6  ;;  %441 = vmatpush3.bf16.msra.mxu0 %v440_v4  ;;  %v41_v15 = vld [vmem:[%s802_s2 + $0x98] sm:$0xff]  ;;  %v24_v16 = vld [vmem:[%s802_s2 + $0x10] sm:$0xff]  ;;  %v70_v19 = vld [vmem:[%s802_s2 + $0x180] sm:$0xff]  ;;  %v169_v57 = vunpack.c.0.s8 %v168_v42 }
   0x5   :  { %v25_v17 = vld [vmem:[%s802_s2 + $0x18] sm:$0xff]  ;;  %446 = vmatprep.subr.bf16.mxu1 %v445_v9  ;;  %442 = vmatprep.subr.bf16.mxu0 %v539_v3  ;;  %v449_v18 = vpack.c.bf16 %v41_v15, %v40_v13  ;;  %v71_v20 = vld [vmem:[%s802_s2 + $0x188] sm:$0xff]  ;;  %v86_v22 = vld [vmem:[%s801_s1] sm:$0x3] }
   0x6   :  { %448 = vmatpush3.bf16.msra.mxu1 %v447_v10  ;;  %v451_v21 = vpack.c.bf16 %v25_v17, %v24_v16  ;;  %v477_v23 = vpack.c.bf16 %v71_v20, %v70_v19  ;;  %v42_v24 = vld [vmem:[%s802_s2 + $0xa0] sm:$0xff]  ;;  %v43_v25 = vld [vmem:[%s802_s2 + $0xa8] sm:$0xff]  ;;  %v72_v32 = vld [vmem:[%s802_s2 + $0x190] sm:$0xff]  ;;  %v172_v7 = vsub.s32 %v169_v57, %v171_v58 }
   0x7   :  { %v54_v26 = vld [vmem:[%s802_s2 + $0x100] sm:$0xff]  ;;  %450 = vmatprep.subr.bf16.mxu1 %v449_v18  ;;  %v453_v27 = vpack.c.bf16 %v43_v25, %v42_v24  ;;  %v55_v28 = vld [vmem:[%s802_s2 + $0x108] sm:$0xff]  ;;  %v73_v33 = vld [vmem:[%s802_s2 + $0x198] sm:$0xff] }
   0x8   :  { %v26_v29 = vld [vmem:[%s802_s2 + $0x20] sm:$0xff]  ;;  %v27_v30 = vld [vmem:[%s802_s2 + $0x28] sm:$0xff]  ;;  %444 = vmatpush3.bf16.msra.mxu0 %v443_v14  ;;  %v479_v31 = vpack.c.bf16 %v55_v28, %v54_v26  ;;  %v44_v34 = vld [vmem:[%s802_s2 + $0xb0] sm:$0xff]  ;;  %v481_v35 = vpack.c.bf16 %v73_v33, %v72_v32 }
   0x9   :  { %478 = vmatprep.subr.bf16.mxu0 %v477_v23  ;;  %v45_v36 = vld [vmem:[%s802_s2 + $0xb8] sm:$0xff]  ;;  %v56_v37 = vld [vmem:[%s802_s2 + $0x110] sm:$0xff]  ;;  %v455_v39 = vpack.c.bf16 %v27_v30, %v26_v29  ;;  %v74_v40 = vld [vmem:[%s802_s2 + $0x1a0] sm:$0xff] }
   0xa   :  { %v57_v38 = vld [vmem:[%s802_s2 + $0x118] sm:$0xff]  ;;  %452 = vmatpush3.bf16.msra.mxu1 %v451_v21  ;;  %v457_v44 = vpack.c.bf16 %v45_v36, %v44_v34  ;;  %v28_v45 = vld [vmem:[%s802_s2 + $0x30] sm:$0xff]  ;;  %v75_v47 = vld [vmem:[%s802_s2 + $0x1a8] sm:$0xff] }
   0xb   :  { %437 = vmatmul.mubr.msk.f32.vlgmr.msra.gmra.mrb[0].mxu0 %vm91_vm1, %v86_v22  ;;  %454 = vmatprep.subr.bf16.mxu1 %v453_v27  ;;  %v29_v46 = vld [vmem:[%s802_s2 + $0x38] sm:$0xff]  ;;  %v483_v48 = vpack.c.bf16 %v57_v38, %v56_v37  ;;  %v46_v49 = vld [vmem:[%s802_s2 + $0xc0] sm:$0xff]  ;;  %v47_v50 = vld [vmem:[%s802_s2 + $0xc8] sm:$0xff]  ;;  %v485_v51 = vpack.c.bf16 %v75_v47, %v74_v40 }
   0xc   :  { %480 = vmatpush3.bf16.msra.mxu0 %v479_v31  ;;  %v58_v52 = vld [vmem:[%s802_s2 + $0x120] sm:$0xff]  ;;  %v59_v53 = vld [vmem:[%s802_s2 + $0x128] sm:$0xff]  ;;  %v459_v54 = vpack.c.bf16 %v29_v46, %v28_v45  ;;  %v76_v55 = vld [vmem:[%s802_s2 + $0x1b0] sm:$0xff]  ;;  %v461_v59 = vpack.c.bf16 %v47_v50, %v46_v49 }
   0xd   :  { %482 = vmatprep.subr.bf16.mxu0 %v481_v35  ;;  %v77_v56 = vld [vmem:[%s802_s2 + $0x1b8] sm:$0xff]  ;;  %v30_v60 = vld [vmem:[%s802_s2 + $0x40] sm:$0xff]  ;;  %v31_v61 = vld [vmem:[%s802_s2 + $0x48] sm:$0xff]  ;;  %v487_v62 = vpack.c.bf16 %v59_v53, %v58_v52 }
   0xe   :  { %456 = vmatpush3.bf16.msra.mxu1 %v455_v39  ;;  %v48_v63 = vld [vmem:[%s802_s2 + $0xd0] sm:$0xff]  ;;  %v49_v0 = vld [vmem:[%s802_s2 + $0xd8] sm:$0xff]  ;;  %v489_v1 = vpack.c.bf16 %v77_v56, %v76_v55  ;;  %v463_v4 = vpack.c.bf16 %v31_v61, %v30_v60  ;;  %v78_v5 = vld [vmem:[%s802_s2 + $0x1c0] sm:$0xff] }
   0xf   :  { %458 = vmatprep.subr.bf16.mxu1 %v457_v44  ;;  %v60_v2 = vld [vmem:[%s802_s2 + $0x130] sm:$0xff]  ;;  %v61_v3 = vld [vmem:[%s802_s2 + $0x138] sm:$0xff]  ;;  %v79_v6 = vld [vmem:[%s802_s2 + $0x1c8] sm:$0xff]  ;;  %v465_v8 = vpack.c.bf16 %v49_v0, %v48_v63 }
  0x10   :  { %484 = vmatpush3.bf16.msra.mxu0 %v483_v48  ;;  %v32_v9 = vld [vmem:[%s802_s2 + $0x50] sm:$0xff]  ;;  %v33_v10 = vld [vmem:[%s802_s2 + $0x58] sm:$0xff]  ;;  %v491_v11 = vpack.c.bf16 %v61_v3, %v60_v2  ;;  %v50_v12 = vld [vmem:[%s802_s2 + $0xe0] sm:$0xff]  ;;  %v493_v14 = vpack.c.bf16 %v79_v6, %v78_v5 }
  0x11   :  { %486 = vmatprep.subr.bf16.mxu0 %v485_v51  ;;  %v51_v13 = vld [vmem:[%s802_s2 + $0xe8] sm:$0xff]  ;;  %v62_v15 = vld [vmem:[%s802_s2 + $0x140] sm:$0xff]  ;;  %v467_v18 = vpack.c.bf16 %v33_v10, %v32_v9  ;;  %v80_v19 = vld [vmem:[%s802_s2 + $0x1d0] sm:$0xff] }
  0x12   :  { %460 = vmatpush3.bf16.msra.mxu1 %v459_v54  ;;  %v63_v16 = vld [vmem:[%s802_s2 + $0x148] sm:$0xff]  ;;  %v21_v17 = vld [vmem:[%s800_s0] sm:$0xff]  ;;  %v81_v20 = vld [vmem:[%s802_s2 + $0x1d8] sm:$0xff]  ;;  %v469_v23 = vpack.c.bf16 %v51_v13, %v50_v12 }
  0x13   :  { %462 = vmatprep.subr.bf16.mxu1 %v461_v59  ;;  %v166_v21 = vcombine.high %v21_v17, %v21_v17  ;;  %v173_v22 = vrot.slane %v21_v17, %v172_v7  ;;  %v34_v24 = vld [vmem:[%s802_s2 + $0x60] sm:$0xff]  ;;  %v35_v25 = vld [vmem:[%s802_s2 + $0x68] sm:$0xff]  ;;  %v495_v26 = vpack.c.bf16 %v63_v16, %v62_v15  ;;  %v52_v27 = vld [vmem:[%s802_s2 + $0xf0] sm:$0xff] }
  0x14   :  { %488 = vmatpush3.bf16.msra.mxu0 %v487_v62  ;;  %v53_v28 = vld [vmem:[%s802_s2 + $0xf8] sm:$0xff] }
  0x15   :  { %490 = vmatprep.subr.bf16.mxu0 %v489_v1  ;;  %v181_v29 = vcombine.high %v173_v22, %v173_v22  ;;  %v180_v30 = vrot.slane %v166_v21, %v172_v7 }
  0x16   :  { %464 = vmatpush3.bf16.msra.mxu1 %v463_v4 }
  0x17   :  { %466 = vmatprep.subr.bf16.mxu1 %v465_v8 }
  0x18   :  { %492 = vmatpush3.bf16.msra.mxu0 %v491_v11 }
  0x19   :  { %10 = vsyncpa [#allocation3], 0  ;;  %494 = vmatprep.subr.bf16.mxu0 %v493_v14  ;;  %v497_v31 = vpack.c.bf16 %v81_v20, %v80_v19  ;;  %v64_v32 = vld [vmem:[%s802_s2 + $0x150] sm:$0xff]  ;;  %v65_v33 = vld [vmem:[%s802_s2 + $0x158] sm:$0xff]  ;;  %v471_v34 = vpack.c.bf16 %v35_v25, %v34_v24  ;;  %251 = vmatprep.mubr.f32.mxu1 %v181_v29  ;;  %v182_v37 = vcombine.high %v180_v30, %v180_v30  ;;  %vm335_vm2 = vcmask 254976  }
  0x1a   :  { %468 = vmatpush3.bf16.msra.mxu1 %v467_v18  ;;  %v82_v35 = vld [vmem:[%s802_s2 + $0x1e0] sm:$0xff]  ;;  %v83_v36 = vld [vmem:[%s802_s2 + $0x1e8] sm:$0xff]  ;;  %v473_v38 = vpack.c.bf16 %v53_v28, %v52_v27  ;;  %v36_v39 = vld [vmem:[%s802_s2 + $0x70] sm:$0xff]  ;;  %v499_v41 = vpack.c.bf16 %v65_v33, %v64_v32 }
  0x1b   :  { %470 = vmatprep.subr.bf16.mxu1 %v469_v23  ;;  %v37_v40 = vld [vmem:[%s802_s2 + $0x78] sm:$0xff]  ;;  %321 = vmatprep.mubr.f32.mxu0 %v182_v37  ;;  %v501_v42 = vpack.c.bf16 %v83_v36, %v82_v35  ;;  %v66_v43 = vld [vmem:[%s802_s2 + $0x160] sm:$0xff]  ;;  %v67_v44 = vld [vmem:[%s802_s2 + $0x168] sm:$0xff] }
  0x1c   :  { %496 = vmatpush3.bf16.msra.mxu0 %v495_v26  ;;  %v475_v45 = vpack.c.bf16 %v37_v40, %v36_v39  ;;  %v84_v46 = vld [vmem:[%s802_s2 + $0x1f0] sm:$0xff]  ;;  %v85_v47 = vld [vmem:[%s802_s2 + $0x1f8] sm:$0xff]  ;;  %v503_v48 = vpack.c.bf16 %v67_v44, %v66_v43  ;;  %v352_v62 = vld [vmem:[%s804_s4] ss:$0 sm:$0xff] }
  0x1d   :  { %498 = vmatprep.subr.bf16.mxu0 %v497_v31  ;;  %v505_v49 = vpack.c.bf16 %v85_v47, %v84_v46  ;;  %v68_v50 = vld [vmem:[%s802_s2 + $0x170] sm:$0xff]  ;;  %v69_v51 = vld [vmem:[%s802_s2 + $0x178] sm:$0xff]  ;;  %s543_s2 = smov [#allocation2]  }
  0x1e   :  { %472 = vmatpush3.bf16.msra.mxu1 %v471_v34  ;;  %v507_v52 = vpack.c.bf16 %v69_v51, %v68_v50  ;;  %s343_s24 = sshll.u32 %s543_s2, 4  ;;  %s344_s24 = int_to_ptr.vmem [resolvable:$true] %s343_s24 }
  0x1f   :  { %474 = vmatprep.subr.bf16.mxu1 %v473_v38  ;;  %s515_s25 = scalar_lea.vmem %s344_s24, 32  ;;  %p520_p1 = scmp.lt.s32.totalorder %s344_s24, %s344_s24 }
  0x20   :  { %500 = vmatpush3.bf16.msra.mxu0 %v499_v41  ;;  %p516_p0 = scmp.ne.s32.totalorder %s344_s24, %s515_s25  ;;  %p521_p2 = scmp.lt.s32.totalorder %s515_s25, %s515_s25 }
  0x21   :  { %502 = vmatprep.subr.bf16.mxu0 %v501_v42 }
  0x22   :  { %476 = vmatpush3.bf16.msra.mxu1 %v475_v45  ;;  %p522_p3 = por %p521_p2, %p520_p1 }
  0x24   :  { %504 = vmatpush3.bf16.msra.mxu0 %v503_v48  ;;  %p523_p4 = pnand %p522_p3, %p516_p0 }
  0x25   :  { %252 = vmatmul.mubr.f32.vlgmr.msra.gmra.mrb[0].mxu1 %v173_v22  ;;  %506 = vmatprep.subr.bf16.mxu0 %v505_v49 }
  0x28   :  { %508 = vmatpush3.bf16.msra.mxu0 %v507_v52 }
  0x2b   :  { %322 = vmatmul.mubr.f32.vlgmr.msra.gmra.mrb[2].mxu0 %v180_v30 }
  0xde   :  { %v161_v53 = vpop.f32.mrb[0].mxu0 }
  0xdf   :  { %v438_v54 = vpop.f32.mrb[1].mxu0 }
  0xf8   :  { %v390_v55 = vpop.f32.mrb[0].mxu1 }
  0xf9   :  { %v391_v56 = vpop.f32.mrb[1].mxu1 }
  0xfa   :  { %v392_v57 = vadd.f32 %v391_v56, %v390_v55 }
  0xfc   :  { %v254_v58 = vadd.f32 %v392_v57, %v161_v53 }
  0xfe   :  { %v425_v59 = vpop.f32.mrb[2].mxu0 }
  0xff   :  { %v426_v60 = vpop.f32.mrb[3].mxu0 }
 0x100   :  { %v427_v61 = vadd.f32 %v426_v60, %v425_v59 }
 0x102   :  { %v324_v63 = vadd.f32 %v427_v61, %v254_v58 }
 0x104   :  { %v334_v0 = vadd.f32 %v352_v62, %v324_v63 }
 0x106   :  { %336 = vst.msk [vmem:[#allocation2] sm:$0x3] %vm335_vm2, %v334_v0 }
 0x107   :  { %526 = shalt.err (!%p523_p4)
}
 0x108   :  { %s527_s28 = scalar_lea.hbm %s805_s5, 32 }
 0x109   :  { %p528_p5 = scmp.ne.s32.totalorder %s805_s5, %s527_s28  ;;  %p531_p6 = scmp.lt.u32.totalorder %s527_s28, %s805_s5 }
 0x10b   :  { %p533_p7 = pnand %p531_p6, %p528_p5 }
 0x10d   :  { %536 = shalt.err (!%p533_p7)
}
 0x10e   :  { %346 = dma.vmem_to_hbm [thread:$0]  %s344_s24, 32, %s805_s5, [#allocation3]  }
 0x10f   :  { %537 = dma.done.wait [#allocation3], 32  }
 0x110   :  { %538 = vsyncadd [#allocation3], 4294967264 }
 0x111   :  { %350 = vsyncpa [#allocation3], 1 }

</bundles_post_ra>
